<compile_context>
chip_gen: v5e
topology: v5e:2x2
jax: 0.10.0
libtpu: 0.0.40
codegen_flags: <defaults>
</compile_context>

<pallas_src>
import functools

import jax
import jax.numpy as jnp
from jax import lax
from jax.experimental import pallas as pl
from jax.experimental.pallas import tpu as pltpu


# ----------------------------------------------------------------------------
# helpers
# ----------------------------------------------------------------------------
def _round_up(x, m):
    return ((x + m - 1) // m) * m


def _block_byte_budget():
    """Per-generation streamed-block byte budget.

    The input block is double-buffered by the BlockSpec pipeline, so keep
    2*block comfortably under the scoped-VMEM default (32 MiB on v7x,
    128 MiB physical on v5e/v6e).  ~6-8 MiB blocks already amortize the
    ~0.35us per-step pipeline overhead to noise.
    """
    try:
        cap = int(pltpu.get_tpu_info().vmem_capacity_bytes)
    except Exception:  # pragma: no cover - conservative fallback
        cap = 64 << 20
    return int(min(max(cap // 8, 2 << 20), 8 << 20))


# ----------------------------------------------------------------------------
# Kernel 1: streamed global-average-pool partial sums
# ----------------------------------------------------------------------------
def _pool_sum_kernel(x_ref, out_ref, *, n_chunks):
    t = pl.program_id(1)  # H*W reduction axis (last grid axis)

    @pl.when(t == 0)
    def _init():
        out_ref[...] = jnp.zeros_like(out_ref)

    rows = x_ref.shape[0]

    # Pure vld + VPU adds over the tile's 128-lane chunks; the cross-lane
    # XLU reduction is deferred to the epilogue kernel.
    if n_chunks <= 8:
        s = x_ref[:, 0:128].astype(jnp.float32)
        for c in range(1, n_chunks):
            s = s + x_ref[:, c * 128:(c + 1) * 128].astype(jnp.float32)
    else:
        def body(c, acc):
            off = pl.multiple_of(c * 128, 128)
            return acc + x_ref[:, pl.ds(off, 128)].astype(jnp.float32)

        s = lax.fori_loop(0, n_chunks, body,
                          jnp.zeros((rows, 128), jnp.float32), unroll=8)

    out_ref[...] += s


def pooled_partial_sums(x2d):
    """x2d: (B*C, H*W) any float dtype -> (R_pad, 128) f32 lane-partial sums."""
    R0, HW0 = x2d.shape
    dtype_bytes = jnp.dtype(x2d.dtype).itemsize

    # Fill sublanes exactly; cap the row tile so large B*C gives several
    # row tiles for the 'parallel' axis (both TensorCores on v7x).
    row_tile = min(_round_up(R0, 8), 256)
    R_pad = _round_up(R0, row_tile)

    # Size the streamed block by bytes against the per-generation budget.
    budget = _block_byte_budget()
    max_lanes = max(128, (budget // (row_tile * dtype_bytes)) // 128 * 128)
    hw_tile = min(_round_up(HW0, 128), max_lanes)
    HW_pad = _round_up(HW0, hw_tile)

    if (R_pad, HW_pad) != (R0, HW0):
        # Zero padding: extra rows/lanes contribute 0 to the pooled sum and
        # the epilogue divides by the TRUE H*W, so numerics are unchanged.
        x2d = jnp.pad(x2d, ((0, R_pad - R0), (0, HW_pad - HW0)))

    grid = (R_pad // row_tile, HW_pad // hw_tile)

    return pl.pallas_call(
        functools.partial(_pool_sum_kernel, n_chunks=hw_tile // 128),
        grid=grid,
        out_shape=jax.ShapeDtypeStruct((R_pad, 128), jnp.float32),
        in_specs=[pl.BlockSpec((row_tile, hw_tile), lambda r, t: (r, t))],
        out_specs=pl.BlockSpec((row_tile, 128), lambda r, t: (r, 0)),
        compiler_params=pltpu.CompilerParams(
            dimension_semantics=("parallel", "arbitrary")),
    )(x2d)


# ----------------------------------------------------------------------------
# Kernel 2: tiny epilogue -- pooled finalize + fused heads + both losses
# ----------------------------------------------------------------------------
def heads_and_losses(p3, w_cat, gt_cat, *, hw_true, d_ex, d_py):
    """p3: (B, C, 128) partial sums; w_cat: (C, d_ex+d_py); gt_cat: (B, d_ex+d_py)."""
    B, C, _ = p3.shape
    D = w_cat.shape[1]
    inv_hw = 1.0 / float(hw_true)
    inv_ex = 1.0 / float(B * d_ex)
    inv_py = 1.0 / float(B * d_py)

    def kernel(p_ref, w_ref, gt_ref, pred_ref, exl_ref, pyl_ref):
        # Single deferred cross-lane reduce + mean.
        pooled = jnp.sum(p_ref[...], axis=-1) * inv_hw            # (B, C)

        if C <= 16:
            # Tiny C: unrolled broadcast-FMAs on the VPU (MXU would be <0.1%
            # utilized while paying full push/pop latency).
            pred = pooled[:, 0:1] * w_ref[0:1, :]
            for c in range(1, C):
                pred = pred + pooled[:, c:c + 1] * w_ref[c:c + 1, :]
        else:
            # Realistic backbone C: one MXU matmul instead of C unrolled FMAs.
            pred = jnp.dot(pooled, w_ref[...],
                           preferred_element_type=jnp.float32)

        # smooth_l1 (beta=1, reduction='mean') on both heads at once.
        d = pred - gt_ref[...]
        ad = jnp.abs(d)
        per = jnp.where(ad < 1.0, 0.5 * d * d, ad - 0.5)
        col = lax.broadcasted_iota(jnp.int32, per.shape, 1)
        exl_ref[0, 0] = jnp.sum(jnp.where(col < d_ex, per, 0.0)) * inv_ex
        pyl_ref[0, 0] = jnp.sum(jnp.where(col >= d_ex, per, 0.0)) * inv_py
        pred_ref[...] = pred

    return pl.pallas_call(
        kernel,
        grid=(1,),
        out_shape=(
            jax.ShapeDtypeStruct((B, D), jnp.float32),
            jax.ShapeDtypeStruct((1, 1), jnp.float32),
            jax.ShapeDtypeStruct((1, 1), jnp.float32),
        ),
        in_specs=[
            pl.BlockSpec((B, C, 128), lambda i: (0, 0, 0)),
            pl.BlockSpec((C, D), lambda i: (0, 0)),
            pl.BlockSpec((B, D), lambda i: (0, 0)),
        ],
        out_specs=(
            pl.BlockSpec((B, D), lambda i: (0, 0)),
            pl.BlockSpec(memory_space=pltpu.SMEM),
            pl.BlockSpec(memory_space=pltpu.SMEM),
        ),
    )(p3, w_cat, gt_cat)


# ----------------------------------------------------------------------------
# NetworkWrapper.forward equivalent
# ----------------------------------------------------------------------------
def network_wrapper_forward(batch, params, *, n_ex=4, n_py=8, n_iters=2):
    inp = batch["inp"]                       # (B, C, H, W)  NCHW like PyTorch
    B, C, H, W = inp.shape
    HW = H * W
    d_ex, d_py = n_ex * 2, n_py * 2

    # Reference keeps only py_pred[-1]; compute just that head slice, and
    # fuse both heads into one concatenated weight / GT / output buffer.
    w_ex = params["w_ex"].astype(jnp.float32)
    w_py_last = params["w_py"][:, (n_iters - 1) * d_py:].astype(jnp.float32)
    w_cat = jnp.concatenate([w_ex, w_py_last], axis=1)             # (C, d_ex+d_py)
    gt_cat = jnp.concatenate(
        [batch["i_gt_4py"].reshape(B, d_ex),
         batch["i_gt_py"].reshape(B, d_py)], axis=1).astype(jnp.float32)

    # Stage 1: HBM-streaming pooled partial sums (native dtype streamed,
    # f32 accumulation inside the kernel).
    partial = pooled_partial_sums(inp.reshape(B * C, HW))          # (R_pad, 128)

    # Stage 2: microscopic finalize + heads + losses.
    p3 = partial[:B * C].reshape(B, C, 128)
    pred_cat, exl11, pyl11 = heads_and_losses(
        p3, w_cat, gt_cat, hw_true=HW, d_ex=d_ex, d_py=d_py)

    ex_loss = exl11[0, 0]
    py_loss = pyl11[0, 0]            # == smooth_l1(py_pred[-1], i_gt_py) / 1
    loss = ex_loss + py_loss

    output = {
        "ex_pred": pred_cat[:, :d_ex].reshape(B, n_ex, 2),
        "py_pred": [pred_cat[:, d_ex:].reshape(B, n_py, 2)],  # reference: [py_pred[-1]]
        "i_gt_4py": batch["i_gt_4py"],
        "i_gt_py": batch["i_gt_py"],
    }
    scalar_stats = {"ex_loss": ex_loss, "py_loss": py_loss, "loss": loss}
    image_stats = {}
    return output, loss, scalar_stats, image_stats


# TODO(synk): FocalLoss / IndL1Loss1d criteria (ct_crit, wh_crit, reg_crit)
# are constructed in __init__ but never used in forward(), so they are
# intentionally not implemented.

if __name__ == "__main__":
    key = jax.random.PRNGKey(0)
    k_inp, k_gt4, k_gtp, k_wex, k_wpy = jax.random.split(key, 5)

    B, C, H, W = 2, 4, 16, 16
    N_EX, N_PY, N_ITERS = 4, 8, 2

    batch = {
        "inp": jax.random.normal(k_inp, (B, C, H, W), dtype=jnp.float32),
        "i_gt_4py": jax.random.normal(k_gt4, (B, N_EX, 2), dtype=jnp.float32),
        "i_gt_py": jax.random.normal(k_gtp, (B, N_PY, 2), dtype=jnp.float32),
    }
    params = {
        "w_ex": 0.1 * jax.random.normal(k_wex, (C, N_EX * 2), dtype=jnp.float32),
        "w_py": 0.1 * jax.random.normal(k_wpy, (C, N_ITERS * N_PY * 2),
                                        dtype=jnp.float32),
    }

    output, loss, scalar_stats, image_stats = network_wrapper_forward(
        batch, params, n_ex=N_EX, n_py=N_PY, n_iters=N_ITERS
    )
    jax.block_until_ready(loss)
    jax.block_until_ready(output["ex_pred"])

    # pure-JAX reference of the whole pipeline
    def ref_sl1(p, t):
        d = p - t
        ad = jnp.abs(d)
        return jnp.mean(jnp.where(ad < 1.0, 0.5 * d * d, ad - 0.5))

    pooled_ref = jnp.mean(batch["inp"].reshape(B, C, H * W), axis=-1)
    ex_ref = pooled_ref @ params["w_ex"]
    py_ref = pooled_ref @ params["w_py"][:, (N_ITERS - 1) * N_PY * 2:]
    loss_ref = ref_sl1(ex_ref.reshape(B, N_EX, 2), batch["i_gt_4py"]) + ref_sl1(
        py_ref.reshape(B, N_PY, 2), batch["i_gt_py"])

    assert jnp.allclose(output["ex_pred"].reshape(B, -1), ex_ref, atol=1e-5)
    assert jnp.allclose(output["py_pred"][0].reshape(B, -1), py_ref, atol=1e-5)
    assert jnp.allclose(loss, loss_ref, atol=1e-5), (loss, loss_ref)

    print("KERNEL_OK")
</pallas_src>

<mosaic_0001>
module attributes {stable_mosaic.version = 11 : i64} {
  func.func @_pool_sum_kernel(%arg0: i32, %arg1: i32, %arg2: memref<8x256xf32, #tpu.memory_space<vmem>>, %arg3: memref<8x128xf32, #tpu.memory_space<vmem>>) attributes {dimension_semantics = [#tpu.dimension_semantics<parallel>, #tpu.dimension_semantics<arbitrary>], iteration_bounds = array<i64: 1, 1>, scalar_prefetch = 0 : i64, scratch_operands = 0 : i64, tpu.core_type = #tpu.core_type<tc>, window_params = [{transform_indices = @transform_0, window_bounds = array<i64: 8, 256>}, {transform_indices = @transform_1, window_bounds = array<i64: 8, 128>}]} {
    %c0_i32 = arith.constant 0 : i32
    %0 = arith.cmpi eq, %arg1, %c0_i32 : i32
    %1 = arith.extui %0 : i1 to i32
    %c0_i32_0 = arith.constant 0 : i32
    %2 = arith.cmpi ne, %1, %c0_i32_0 : i32
    scf.if %2 {
      %cst = arith.constant 0.000000e+00 : f32
      %9 = vector.broadcast %cst : f32 to vector<8x128xf32>
      %c0_7 = arith.constant 0 : index
      %c0_8 = arith.constant 0 : index
      %10 = vector.load %arg3[%c0_7, %c0_8] : memref<8x128xf32, #tpu.memory_space<vmem>>, vector<8x128xf32>
      tpu.vector_store %arg3[%c0_7, %c0_8], %9 {strides = array<i32>} : memref<8x128xf32, #tpu.memory_space<vmem>>, vector<8x128xf32>,
    } else {
    }
    %c0 = arith.constant 0 : index
    %c0_1 = arith.constant 0 : index
    %3 = vector.load %arg2[%c0, %c0_1] : memref<8x256xf32, #tpu.memory_space<vmem>>, vector<8x128xf32>
    %c0_2 = arith.constant 0 : index
    %c128 = arith.constant 128 : index
    %4 = vector.load %arg2[%c0_2, %c128] : memref<8x256xf32, #tpu.memory_space<vmem>>, vector<8x128xf32>
    %5 = arith.addf %3, %4 : vector<8x128xf32>
    %c0_3 = arith.constant 0 : index
    %c0_4 = arith.constant 0 : index
    %6 = vector.load %arg3[%c0_3, %c0_4] : memref<8x128xf32, #tpu.memory_space<vmem>>, vector<8x128xf32>
    %7 = arith.addf %6, %5 : vector<8x128xf32>
    %c0_5 = arith.constant 0 : index
    %c0_6 = arith.constant 0 : index
    %8 = vector.load %arg3[%c0_5, %c0_6] : memref<8x128xf32, #tpu.memory_space<vmem>>, vector<8x128xf32>
    tpu.vector_store %arg3[%c0_5, %c0_6], %7 {strides = array<i32>} : memref<8x128xf32, #tpu.memory_space<vmem>>, vector<8x128xf32>,
    return
  }
  func.func @transform_0(%arg0: i32, %arg1: i32) -> (i32, i32) {
    %c0_i32 = arith.constant 0 : i32
    return %arg0, %arg1 : i32, i32
  }
  func.func @transform_1(%arg0: i32, %arg1: i32) -> (i32, i32) {
    %c0_i32 = arith.constant 0 : i32
    %c0_i32_0 = arith.constant 0 : i32
    return %arg0, %c0_i32 : i32, i32
  }
}

</mosaic_0001>

<bundles_post_ra>
// kernel: tpu_custom_call.1
= control target key start
LH: loop header
LB: loop body
LE: loop exit
PB: predicated region body
PF: predicated region fallthrough
CT: control target
= control target key end

     0   :  { %6 = vsyncpa [#allocation3], 0  ;;  %s124_s0 = inlined_call_operand.hbm [shape: f32[8,256], index: 0, kind: input, shape index: {}]   ;;  %s125_s1 = inlined_call_operand.hbm [shape: f32[8,128], index: 1, kind: output, shape index: {}]  }
   0x1   :  { %7 = vsyncpa [#allocation4], 0  ;;  %s13_s8 = sshll.u32 %s124_s0, 4  ;;  %s106_s9 = smov [#allocation2]   ;;  %s14_s8 = int_to_ptr.hbm [resolvable:$true] %s13_s8 }
   0x2   :  { %s15_s10 = sshll.u32 %s106_s9, 4  ;;  %s16_s10 = int_to_ptr.vmem [resolvable:$true] %s15_s10 }
   0x3   :  { %18 = dma.hbm_to_vmem [thread:$0]  %s14_s8, 256, %s16_s10, [#allocation3]  }
   0x4   :  { %102 = dma.done.wait [#allocation3], 256  }
   0x5   :  { %103 = vsyncadd [#allocation3], 4294967040  ;;  %v28_v0 = vld [vmem:[#allocation2] sm:$0xff]  ;;  %v29_v1 = vld [vmem:[#allocation2 + $0x8] sm:$0xff]  ;;  %s107_s11 = smov [#allocation5]   ;;  %s41_s15 = sshll.u32 %s125_s1, 4  ;;  %s42_s15 = int_to_ptr.hbm [resolvable:$true] %s41_s15 }
   0x6   :  { %s39_s12 = sshll.u32 %s107_s11, 4  ;;  %v30_v2 = vadd.f32 %v29_v1, %v28_v0  ;;  %s40_s12 = int_to_ptr.vmem [resolvable:$true] %s39_s12 }
   0x8   :  { %33 = vst [vmem:[#allocation5] sm:$0xff] %v30_v2 }
   0x9   :  { %44 = dma.vmem_to_hbm [thread:$0]  %s40_s12, 128, %s42_s15, [#allocation4]  }
   0xa   :  { %104 = dma.done.wait [#allocation4], 128  }
   0xb   :  { %105 = vsyncadd [#allocation4], 4294967168 }
   0xc   :  { %49 = vsyncpa [#allocation3], 1 }
   0xd   :  { %50 = vsyncpa [#allocation4], 1 }

</bundles_post_ra>
